<compile_context>
chip_gen: v7x
topology: tpu7x:2x2x1
jax: 0.10.0
libtpu: 0.0.40
codegen_flags: <defaults>
</compile_context>

<pallas_src>
import functools

import jax
import jax.numpy as jnp
import numpy as np
from jax import lax
from jax.experimental import pallas as pl
from jax.experimental.pallas import tpu as pltpu

LANES = 128
SUBLANES = 8
NUM_CORES = 2          # leading "parallel" grid axis (uses both TCs on v7x)
MAX_CHUNK_ROWS = 512   # inner accumulation slice (256 KiB f32 temp max)


def _rel_mse_kernel(pred_ref, tgt_ref, out_ref, *, epsilon, chunk_rows, n_chunks):
    """Accumulate per-(sublane, lane) partial sums of squared relative error."""

    @pl.when(pl.program_id(1) == 0)
    def _():
        out_ref[...] = jnp.zeros_like(out_ref)

    def body(j, acc):
        start = pl.multiple_of(j * chunk_rows, chunk_rows)
        p = pred_ref[pl.ds(start, chunk_rows), :].astype(jnp.float32)
        t = tgt_ref[pl.ds(start, chunk_rows), :].astype(jnp.float32)
        # Full-precision reciprocal (EUP path) instead of a VALU divide sequence.
        inv = pl.reciprocal(jnp.abs(t) + epsilon, approx=False)
        rel = (p - t) * inv
        sq = rel * rel
        # Fold the (chunk_rows, 128) slice into the (8, 128) vreg-shaped carry:
        # pure VPU adds over the leading axis, no cross-lane XLU work in the loop.
        return acc + jnp.sum(
            sq.reshape(chunk_rows // SUBLANES, SUBLANES, LANES), axis=0
        )

    acc = lax.fori_loop(
        0,
        n_chunks,
        body,
        jnp.zeros((SUBLANES, LANES), jnp.float32),
        unroll=(n_chunks <= 8),
    )
    out_ref[...] += acc[None, :, :]


def _pick_max_tile_rows():
    """Per-generation tile cap: stay inside the scoped-VMEM default everywhere."""
    kind = ""
    try:
        kind = jax.devices()[0].device_kind.lower()
    except Exception:
        pass
    if ("v6" in kind) or ("v7" in kind) or ("7x" in kind):
        # 4 MiB per f32 input block; 2 inputs x 2 buffers = 16 MiB < 32 MiB default.
        return 8192
    # v5e's scoped-VMEM default is 16 MiB: 2 MiB blocks -> 8 MiB double-buffered.
    return 4096


def _choose_layout(total_n, max_tile_rows):
    """Pick (n_rows, rows_per_core, tile_rows).

    n_rows = NUM_CORES * rows_per_core, rows_per_core % tile_rows == 0,
    tile_rows % 8 == 0, minimizing padding.
    """
    rows = -(-total_n // LANES)                       # 128-lane rows needed
    align = NUM_CORES * SUBLANES
    rows = -(-rows // align) * align                  # core- & sublane-aligned
    rows_per_core = rows // NUM_CORES

    cap = min(max_tile_rows, rows_per_core)
    cap -= cap % SUBLANES
    cap = max(cap, SUBLANES)

    # Largest tile that divides the per-core row count exactly -> no extra padding.
    tile = SUBLANES
    for cand in range(cap, SUBLANES - 1, -SUBLANES):
        if rows_per_core % cand == 0:
            tile = cand
            break
    if tile < min(cap, 256):
        # Ragged row count with no decent divisor: pad per-core rows up to a
        # multiple of a healthy tile instead of crawling with tiny tiles.
        rows_per_core = -(-rows_per_core // cap) * cap
        tile = cap
    return NUM_CORES * rows_per_core, rows_per_core, tile


def _choose_chunk(tile_rows):
    """Largest divisor of tile_rows that is a multiple of 8 and <= MAX_CHUNK_ROWS."""
    m = tile_rows // SUBLANES
    limit = MAX_CHUNK_ROWS // SUBLANES
    d = 1
    for cand in range(min(limit, m), 0, -1):
        if m % cand == 0:
            d = cand
            break
    return d * SUBLANES


def relative_mse_loss(predictions, targets, epsilon=1e-6, *, max_tile_rows=None):
    assert predictions.shape == targets.shape
    total_n = 1
    for d in predictions.shape:
        total_n *= int(d)

    if max_tile_rows is None:
        max_tile_rows = _pick_max_tile_rows()

    n_rows, rows_per_core, tile_rows = _choose_layout(total_n, max_tile_rows)
    chunk_rows = _choose_chunk(tile_rows)
    n_chunks = tile_rows // chunk_rows
    steps_per_core = rows_per_core // tile_rows
    pad = n_rows * LANES - total_n

    p_flat = predictions.reshape(-1)   # native dtype; widened to f32 on-chip
    t_flat = targets.reshape(-1)
    if pad:
        # Zero padding contributes exactly 0 to the sum: (0 - 0) / (|0| + eps) == 0.
        # TODO(synk): for ragged sizes, replace this jnp.pad with in-kernel tail
        # masking (broadcasted_iota + where on the last tile) to avoid the padded
        # HBM copy; the benchmark shape tiles exactly, so this path is unused here.
        p_flat = jnp.pad(p_flat, (0, pad))
        t_flat = jnp.pad(t_flat, (0, pad))
    p2d = p_flat.reshape(n_rows, LANES)
    t2d = t_flat.reshape(n_rows, LANES)

    kernel = functools.partial(
        _rel_mse_kernel,
        epsilon=float(epsilon),
        chunk_rows=chunk_rows,
        n_chunks=n_chunks,
    )

    in_map = lambda c, i: (c * steps_per_core + i, 0)
    out_map = lambda c, i: (c, 0, 0)

    # Per-core (8, 128) lane-dense partial-sum blocks; each block's index is constant
    # across the reduction axis, so it stays resident in VMEM as the accumulator.
    partial = pl.pallas_call(
        kernel,
        out_shape=jax.ShapeDtypeStruct((NUM_CORES, SUBLANES, LANES), jnp.float32),
        grid_spec=pltpu.PrefetchScalarGridSpec(
            num_scalar_prefetch=0,
            grid=(NUM_CORES, steps_per_core),
            in_specs=[
                pl.BlockSpec((tile_rows, LANES), in_map),
                pl.BlockSpec((tile_rows, LANES), in_map),
            ],
            out_specs=pl.BlockSpec((1, SUBLANES, LANES), out_map),
        ),
        compiler_params=pltpu.CompilerParams(
            dimension_semantics=("parallel", "arbitrary"),
        ),
    )(p2d, t2d)

    # Final cross-core / cross-lane reduction + mean scaling in plain JAX (runs once).
    return jnp.sum(partial) / jnp.float32(total_n)


if __name__ == "__main__":
    key = jax.random.PRNGKey(0)
    k1, k2 = jax.random.split(key)
    shape = (2, 4, 16, 16)  # NCHW-style input; the loss is shape-agnostic
    predictions = jax.random.normal(k1, shape, dtype=jnp.float32)
    targets = jax.random.normal(k2, shape, dtype=jnp.float32)

    loss = relative_mse_loss(predictions, targets, epsilon=1e-6)
    loss = jax.block_until_ready(loss)

    # Reference in float64 (the "true" value). The sum is heavy-tailed (targets near
    # zero blow up the relative error), so ANY fp32 reduction is only order-accurate
    # to ~1e-5 relative; compare against the f64 truth with an fp32-appropriate rtol.
    p64 = np.asarray(predictions, dtype=np.float64)
    t64 = np.asarray(targets, dtype=np.float64)
    rel = (p64 - t64) / (np.abs(t64) + 1e-6)
    ref = float((rel ** 2).mean())

    kernel_val = float(loss)
    assert np.isfinite(kernel_val), kernel_val
    assert abs(kernel_val - ref) <= 1e-4 * abs(ref), (kernel_val, ref)

    print("KERNEL_OK")
</pallas_src>

<mosaic_0001>
module attributes {stable_mosaic.version = 11 : i64} {
  func.func @_rel_mse_kernel(%arg0: i32, %arg1: i32, %arg2: memref<8x128xf32, #tpu.memory_space<vmem>>, %arg3: memref<8x128xf32, #tpu.memory_space<vmem>>, %arg4: memref<1x8x128xf32, #tpu.memory_space<vmem>>) attributes {dimension_semantics = [#tpu.dimension_semantics<parallel>, #tpu.dimension_semantics<arbitrary>], iteration_bounds = array<i64: 2, 1>, scalar_prefetch = 0 : i64, scratch_operands = 0 : i64, tpu.core_type = #tpu.core_type<tc>, window_params = [{transform_indices = @transform_0, window_bounds = array<i64: 8, 128>}, {transform_indices = @transform_1, window_bounds = array<i64: 8, 128>}, {transform_indices = @transform_2, window_bounds = array<i64: 1, 8, 128>}]} {
    %c0_i32 = arith.constant 0 : i32
    %0 = arith.cmpi eq, %arg1, %c0_i32 : i32
    %1 = arith.extui %0 : i1 to i32
    %c0_i32_0 = arith.constant 0 : i32
    %2 = arith.cmpi ne, %1, %c0_i32_0 : i32
    scf.if %2 {
      %cst_11 = arith.constant 0.000000e+00 : f32
      %24 = vector.broadcast %cst_11 : f32 to vector<1x8x128xf32>
      %c0_12 = arith.constant 0 : index
      %c0_13 = arith.constant 0 : index
      %c0_14 = arith.constant 0 : index
      %25 = vector.load %arg4[%c0_12, %c0_13, %c0_14] : memref<1x8x128xf32, #tpu.memory_space<vmem>>, vector<1x8x128xf32>
      tpu.vector_store %arg4[%c0_12, %c0_13, %c0_14], %24 {strides = array<i32>} : memref<1x8x128xf32, #tpu.memory_space<vmem>>, vector<1x8x128xf32>,
    } else {
    }
    %cst = arith.constant 0.000000e+00 : f32
    %3 = vector.broadcast %cst : f32 to vector<8x128xf32>
    %c0_i32_1 = arith.constant 0 : i32
    %c8_i32 = arith.constant 8 : i32
    %4 = arith.muli %c0_i32_1, %c8_i32 : i32
    %5 = tpu.assume_multiple %4, 8 : i32
    %6 = arith.index_cast %5 : i32 to index
    %c0 = arith.constant 0 : index
    %7 = vector.load %arg2[%6, %c0] : memref<8x128xf32, #tpu.memory_space<vmem>>, vector<8x128xf32>
    %8 = arith.index_cast %5 : i32 to index
    %c0_2 = arith.constant 0 : index
    %9 = vector.load %arg3[%8, %c0_2] : memref<8x128xf32, #tpu.memory_space<vmem>>, vector<8x128xf32>
    %10 = math.absf %9 : vector<8x128xf32>
    %cst_3 = arith.constant 9.99999997E-7 : f32
    %11 = vector.broadcast %cst_3 : f32 to vector<8x128xf32>
    %12 = arith.addf %10, %11 : vector<8x128xf32>
    %13 = tpu.reciprocal %12 : vector<8x128xf32> -> vector<8x128xf32>
    %14 = arith.subf %7, %9 : vector<8x128xf32>
    %15 = arith.mulf %14, %13 : vector<8x128xf32>
    %16 = arith.mulf %15, %15 : vector<8x128xf32>
    %17 = vector.shape_cast %16 : vector<8x128xf32> to vector<1x8x128xf32>
    %cst_4 = arith.constant dense<0.000000e+00> : vector<8x128xf32>
    %18 = vector.multi_reduction <add>, %17, %cst_4 [0] : vector<1x8x128xf32> to vector<8x128xf32>
    %19 = arith.addf %3, %18 : vector<8x128xf32>
    %c1_i32 = arith.constant 1 : i32
    %c0_5 = arith.constant 0 : index
    %c0_6 = arith.constant 0 : index
    %c0_7 = arith.constant 0 : index
    %20 = vector.load %arg4[%c0_5, %c0_6, %c0_7] : memref<1x8x128xf32, #tpu.memory_space<vmem>>, vector<1x8x128xf32>
    %21 = vector.shape_cast %19 : vector<8x128xf32> to vector<1x8x128xf32>
    %22 = arith.addf %20, %21 : vector<1x8x128xf32>
    %c0_8 = arith.constant 0 : index
    %c0_9 = arith.constant 0 : index
    %c0_10 = arith.constant 0 : index
    %23 = vector.load %arg4[%c0_8, %c0_9, %c0_10] : memref<1x8x128xf32, #tpu.memory_space<vmem>>, vector<1x8x128xf32>
    tpu.vector_store %arg4[%c0_8, %c0_9, %c0_10], %22 {strides = array<i32>} : memref<1x8x128xf32, #tpu.memory_space<vmem>>, vector<1x8x128xf32>,
    return
  }
  func.func @transform_0(%arg0: i32, %arg1: i32) -> (i32, i32) {
    %c1_i32 = arith.constant 1 : i32
    %0 = arith.muli %arg0, %c1_i32 : i32
    %1 = arith.addi %0, %arg1 : i32
    %c0_i32 = arith.constant 0 : i32
    %c0_i32_0 = arith.constant 0 : i32
    return %1, %c0_i32 : i32, i32
  }
  func.func @transform_1(%arg0: i32, %arg1: i32) -> (i32, i32) {
    %c1_i32 = arith.constant 1 : i32
    %0 = arith.muli %arg0, %c1_i32 : i32
    %1 = arith.addi %0, %arg1 : i32
    %c0_i32 = arith.constant 0 : i32
    %c0_i32_0 = arith.constant 0 : i32
    return %1, %c0_i32 : i32, i32
  }
  func.func @transform_2(%arg0: i32, %arg1: i32) -> (i32, i32, i32) {
    %c0_i32 = arith.constant 0 : i32
    %c0_i32_0 = arith.constant 0 : i32
    %c0_i32_1 = arith.constant 0 : i32
    return %arg0, %c0_i32, %c0_i32_0 : i32, i32, i32
  }
}

</mosaic_0001>

<bundles_post_ra>
// kernel: tpu_custom_call.1
= control target key start
LH: loop header
LB: loop body
LE: loop exit
PB: predicated region body
PF: predicated region fallthrough
CT: control target
= control target key end

     0   :  { %7 = vsyncpa [#allocation3], 0  ;;  %s823_s0 = inlined_call_operand.hbm [shape: f32[16,128], index: 0, kind: input, shape index: {}]   ;;  %s824_s1 = inlined_call_operand.hbm [shape: f32[16,128], index: 1, kind: input, shape index: {}]   ;;  %s825_s2 = inlined_call_operand.hbm [shape: f32[2,8,128], index: 2, kind: output, shape index: {}]  }
   0x1   :  { %9 = vsyncpa [#allocation3 + $0x1], 0 }
   0x2   :  { %10 = vsyncpa [#allocation6], 0 }
   0x3   :  { %12 = vsyncpa [#allocation6 + $0x1], 0 }
   0x4   :  { %13 = vsyncpa [#allocation4], 0 }
   0x5   :  { %15 = vsyncpa [#allocation4 + $0x1], 0  ;;  %s603_s9 = smov 0   ;;  %s605_s10 = smov 0  }
   0x6   :  { %s607_s11 = smov 0   ;;  %s609_s12 = smov 0  }
   0x7   :  { %s611_s13 = smov 0   ;;  %s613_s14 = smov 0  }
   0x8 LB: > { %s351_s15 = sadd.s32 4294967295, %s583_s14   ;;  %s352_s16 = sadd.s32 4294967294, %s583_s14   ;;  %s583_s14 = sphi %s613_s14, %s21_s14   ;;  %s579_s13 = sphi %s611_s13, %s845_s13   ;;  %s575_s12 = sphi %s609_s12, %s844_s12   ;;  %s571_s11 = sphi %s607_s11, %s843_s11   ;;  %s567_s10 = sphi %s605_s10, %s842_s10   ;;  %s563_s9 = sphi %s603_s9, %s841_s9  }
   0x9   : > { %s33_s17 = sadd.s32 1, %s579_s13  ;;  %s42_s18 = sadd.s32 1, %s571_s11 }
   0xa   : > { %p35_p0 = scmp.ge.s32.totalorder %s33_s17, 2  ;;  %p49_p1 = scmp.ne.s32.totalorder %s571_s11, %s567_s10 }
   0xb   : > { %p50_p2 = scmp.eq.s32.totalorder %s583_s14, 0  ;;  %p55_p3 = scmp.ne.s32.totalorder %s567_s10, %s563_s9 }
   0xc   : > { %s847_s17 = smov (%p35_p0, %s33_s17), 0  ;;  %p56_p5 = scmp.eq.s32.totalorder %s351_s15, 0 }
   0xd   : > { %p644_p4 = por %p50_p2, %p49_p1  ;;  %s39_s20 = ssub.s32 %s579_s13, %s847_s17 }
   0xe   : > { %p107_p6 = scmp.eq.s32.totalorder %s351_s15, 1  ;;  %p40_p7 = scmp.eq.s32.totalorder %s39_s20, 0 }
   0xf   : > { %p650_p8 = por %p56_p5, %p55_p3  ;;  %p113_p10 = scmp.eq.s32.totalorder %s352_s16, 1 }
  0x10   : > { %p654_p9 = por %p107_p6, %p49_p1  ;;  %p384_p13 = scmp.lt.s32.totalorder %s583_s14, 2 }
  0x11   : > { %s829_s21 = scalar_select %p650_p8, 1, 0 }
  0x12   : > { %s830_s22 = scalar_select %p654_p9, 1, 0 }
  0x13   : > { %s659_s23 = scalar_select %p40_p7, %s571_s11, %s42_s18  }
  0x14   : > { %p661_p11 = por %p113_p10, %p55_p3  ;;  %s668_s25 = sand.u32 1, %s571_s11  }
  0x15   : > { %s355_s26 = sshll.u32 %s668_s25, 3  ;;  %s356_s27 = sshll.u32 %s579_s13, 7 }
  0x16   : > { %s831_s24 = scalar_select %p661_p11, 1, 0 }
  0x17   : > { %s677_s30 = scalar_lea.hbm %s823_s0, %s356_s27  ;;  %s137_s3 = scalar_lea.vmem [#allocation2], %s355_s26 }
  0x18   : > { %s145_s4 = sshll.u32 %s137_s3, 4  ;;  %p685_p0 = pnand %p384_p13, %p644_p4  ;;  %s681_s4 = int_to_ptr.vmem [resolvable:$true] %s145_s4 }
  0x19   : > { %s134_s6 = scalar_lea.sflag [#allocation3], %s668_s25  ;;  %s437_s7 = scalar_lea.hbm %s677_s30, 128 }
  0x1a   : > { %p438_p3 = scmp.ne.s32.totalorder %s677_s30, %s437_s7  ;;  %p439_p5 = pneg %p685_p0 }
  0x1b   : > { %s442_s16 = scalar_lea.hbm %s823_s0, 256  ;;  %p443_p4 = scmp.lt.u32.totalorder %s677_s30, %s823_s0 }
  0x1c   : > { %p440_p6 = pnand %p439_p5, %p438_p3  ;;  %p444_p10 = scmp.lt.u32.totalorder %s442_s16, %s437_s7 }
  0x1d   : > { %p446_p12 = scmp.lt.u32.totalorder %s437_s7, %s677_s30 }
  0x1e   : > { %p441_p7 = pneg %p440_p6  ;;  %p445_p13 = por %p444_p10, %p443_p4 }
  0x20   : > { %p447_p1 = por %p446_p12, %p445_p13 }
  0x22   : > { %p448_p2 = pnand %p447_p1, %p441_p7 }
  0x24   : > { %451 = shalt.err (!%p448_p2)
}
  0x25   : > { %s452_s20 = scalar_lea.vmem %s681_s4, 128  ;;  %s585_s28 = smov [#allocation2]  }
  0x26   : > { %p453_p3 = scmp.ne.s32.totalorder %s681_s4, %s452_s20  ;;  %s457_s29 = sshll.u32 %s585_s28, 4  ;;  %s458_s29 = int_to_ptr.vmem [resolvable:$false] %s457_s29 }
  0x27   : > { %s459_s3 = scalar_lea.vmem %s458_s29, 256  ;;  %p460_p9 = scmp.lt.s32.totalorder %s681_s4, %s458_s29 }
  0x28   : > { %p455_p6 = pnand %p453_p3, %p439_p5  ;;  %p461_p4 = scmp.lt.s32.totalorder %s459_s3, %s452_s20 }
  0x2a   : > { %p456_p11 = pneg %p455_p6  ;;  %p462_p10 = por %p461_p4, %p460_p9 }
  0x2c   : > { %p463_p12 = pnand %p462_p10, %p456_p11 }
  0x2e   : > { %466 = shalt.err (!%p463_p12)
}
  0x2f   : > { %376 = dma.hbm_to_vmem [thread:$0]  (!%p685_p0), %s677_s30, 128, %s681_s4, %s134_s6  }
  0x30   : > { %p833_p1 = scmp.lt.s32.totalorder %s583_s14, 3  ;;  %p834_p2 = scmp.ge.s32.totalorder %s583_s14, 1 }
  0x31   : > { %s730_s16 = scalar_lea.hbm %s824_s1, %s356_s27  ;;  %s156_s18 = scalar_lea.vmem [#allocation5], %s355_s26 }
  0x32   : > { %p721_p7 = pnand %p834_p2, %p833_p1  ;;  %s164_s19 = sshll.u32 %s156_s18, 4  ;;  %s165_s19 = int_to_ptr.vmem [resolvable:$true] %s164_s19 }
  0x33   : > { %s153_s30 = scalar_lea.sflag [#allocation6], %s668_s25  ;;  %s467_s4 = scalar_lea.hbm %s730_s16, 128 }
  0x34   : > { %s835_s7 = scalar_select %p721_p7, 1, 0 }
  0x35   : > { %p468_p9 = scmp.ne.s32.totalorder %s730_s16, %s467_s4  ;;  %s472_s27 = scalar_lea.hbm %s824_s1, 256 }
  0x36   : > { %p473_p3 = scmp.lt.u32.totalorder %s730_s16, %s824_s1  ;;  %p474_p6 = scmp.lt.u32.totalorder %s472_s27, %s467_s4 }
  0x37   : > { %p470_p11 = pnand %p468_p9, %p439_p5  ;;  %p476_p10 = scmp.lt.u32.totalorder %s467_s4, %s730_s16 }
  0x38   : > { %p475_p4 = por %p474_p6, %p473_p3 }
  0x39   : > { %p471_p13 = pneg %p470_p11 }
  0x3a   : > { %p477_p12 = por %p476_p10, %p475_p4 }
  0x3c   : > { %p478_p1 = pnand %p477_p12, %p471_p13 }
  0x3e   : > { %481 = shalt.err (!%p478_p1)
}
  0x3f   : > { %s482_s25 = scalar_lea.vmem %s165_s19, 128  ;;  %s586_s26 = smov [#allocation5]  }
  0x40   : > { %p483_p2 = scmp.ne.s32.totalorder %s165_s19, %s482_s25  ;;  %s487_s3 = sshll.u32 %s586_s26, 4  ;;  %s488_s3 = int_to_ptr.vmem [resolvable:$false] %s487_s3 }
  0x41   : > { %s489_s8 = scalar_lea.vmem %s488_s3, 256  ;;  %p490_p8 = scmp.lt.s32.totalorder %s165_s19, %s488_s3 }
  0x42   : > { %p485_p9 = pnand %p483_p2, %p439_p5  ;;  %p491_p7 = scmp.lt.s32.totalorder %s489_s8, %s482_s25 }
  0x44   : > { %p486_p11 = pneg %p485_p9  ;;  %p492_p3 = por %p491_p7, %p490_p8 }
  0x46   : > { %p493_p6 = pnand %p492_p3, %p486_p11 }
  0x48   : > { %496 = shalt.err (!%p493_p6)
}
  0x49   : > { %379 = dma.hbm_to_vmem [thread:$0]  (!%p685_p0), %s730_s16, 128, %s165_s19, %s153_s30  }
  0x4a   : > { %p836_p13 = scmp.ne.s32.totalorder %s835_s7, 0 }
  0x4b   : > { %s757_s15 = sand.u32 (!%p836_p13), 1, %s567_s10   ;;  %p837_p5 = scmp.ne.s32.totalorder (!%p836_p13), %s829_s21, 0 }
  0x4c   : > { %173 = sbr.rel (%p836_p13) target bundleno = 120 (0x78), region = 28  ;;  %s360_s18 = sshll.u32 (!%p836_p13), %s757_s15, 3 }
  0x4d   : > { %s176_s4 = scalar_lea.sflag (!%p836_p13), [#allocation3], %s757_s15  ;;  %s179_s6 = scalar_lea.vmem (!%p836_p13), [#allocation2], %s360_s18 }
  0x53   : > { %550 = dma.done.wait (%p837_p5), %s176_s4, 128  }
  0x54   : > { %552 = vsyncadd (%p837_p5), %s176_s4, 4294967168  ;;  %s185_s5 = scalar_lea.sflag [#allocation6], %s757_s15  ;;  %s188_s16 = scalar_lea.vmem [#allocation5], %s360_s18 }
  0x55   : > { %554 = dma.done.wait (%p837_p5), %s185_s5, 128  }
  0x56   : > { %556 = vsyncadd (%p837_p5), %s185_s5, 4294967168  ;;  %v222_v0 = vld [vmem:[%s188_s16] sm:$0xff]  ;;  %v221_v3 = vld [vmem:[%s179_s6] sm:$0xff]  ;;  %s364_s7 = sshll.u32 %s575_s12, 7  ;;  %s213_s19 = scalar_lea.vmem [#allocation7], %s360_s18 }
  0x57   : > { %v223_v1 = vand.u32 2147483647, %v222_v0  ;;  %v226_v4 = vsub.f32 %v221_v3, %v222_v0  ;;  %s248_s30 = sshll.u32 %s213_s19, 4  ;;  %s774_s21 = scalar_lea.hbm %s825_s2, %s364_s7  ;;  %s776_s30 = int_to_ptr.vmem [resolvable:$true] %s248_s30 }
  0x58   : > { %s235_s28 = scalar_lea.sflag [#allocation4], %s757_s15  ;;  %s497_s29 = scalar_lea.vmem %s776_s30, 128 }
  0x59   : > { %v224_v2 = vadd.f32 1e-06, %v223_v1  ;;  %p498_p8 = scmp.ne.s32.totalorder %s776_s30, %s497_s29  ;;  %p838_p0 = scmp.ne.s32.totalorder %s830_s22, 0 }
  0x5a   : > { %s587_s12 = smov [#allocation7]  }
  0x5b   : > { %435 = vrcp.f32 %v224_v2  ;;  %p499_p7 = pnand %p498_p8, %p838_p0  ;;  %s501_s25 = sshll.u32 %s587_s12, 4  ;;  %s502_s25 = int_to_ptr.vmem [resolvable:$false] %s501_s25 }
  0x5c   : > { %s503_s26 = scalar_lea.vmem %s502_s25, 256  ;;  %p504_p10 = scmp.lt.s32.totalorder %s776_s30, %s502_s25 }
  0x5d   : > { %p500_p4 = pneg %p499_p7  ;;  %p505_p12 = scmp.lt.s32.totalorder %s503_s26, %s497_s29 }
  0x5f   : > { %p506_p1 = por %p505_p12, %p504_p10 }
  0x61   : > { %p507_p2 = pnand %p506_p1, %p500_p4 }
  0x65   : > { %v436_v5 = vpop.eup %435 }
  0x66   : > { %v227_v6 = vmul.f32 %v436_v5, %v226_v4 }
  0x68   : > { %v228_v7 = vmul.f32 %v227_v6, %v227_v6 }
  0x6a   : > { %233 = vst [vmem:[%s213_s19] sm:$0xff] %v228_v7 }
  0x6b   : > { %510 = shalt.err (!%p507_p2)
}
  0x6c   : > { %s511_s3 = scalar_lea.hbm %s774_s21, 128  ;;  %s515_s18 = scalar_lea.hbm %s825_s2, 256 }
  0x6d   : > { %p512_p9 = scmp.ne.s32.totalorder %s774_s21, %s511_s3  ;;  %p516_p6 = scmp.lt.u32.totalorder %s774_s21, %s825_s2 }
  0x6e   : > { %p517_p13 = scmp.lt.u32.totalorder %s515_s18, %s511_s3  ;;  %p519_p8 = scmp.lt.u32.totalorder %s511_s3, %s774_s21 }
  0x6f   : > { %p513_p11 = pnand %p512_p9, %p838_p0 }
  0x70   : > { %p518_p5 = por %p517_p13, %p516_p6 }
  0x71   : > { %p514_p3 = pneg %p513_p11 }
  0x72   : > { %p520_p7 = por %p519_p8, %p518_p5 }
  0x74   : > { %p521_p4 = pnand %p520_p7, %p514_p3 }
  0x76   : > { %524 = shalt.err (!%p521_p4)
}
  0x77   : > { %371 = dma.vmem_to_hbm [thread:$0]  (%p838_p0), %s776_s30, 128, %s774_s21, %s235_s28  }
  0x78 PF: > { %s260_s5 = sand.u32 1, %s563_s9   ;;  %p839_p10 = scmp.ne.s32.totalorder %s831_s24, 0 }
  0x79   : > { %p840_p12 = scmp.ge.s32.totalorder %s583_s14, 2  ;;  %s261_s16 = scalar_lea.sflag [#allocation4], %s260_s5 }
  0x7b   : > { %p381_p1 = pnand %p840_p12, %p839_p10 }
  0x7d   : > { %558 = dma.done.wait (!%p381_p1), %s261_s16, 128  }
  0x7e   : > { %560 = vsyncadd (!%p381_p1), %s261_s16, 4294967168  ;;  %s21_s14 = sadd.s32 1, %s583_s14   ;;  %s841_s9 = smov %s567_s10 }
  0x7f   : > { %p18_p2 = scmp.ge.s32.totalorder %s21_s14, 4   ;;  %s842_s10 = smov %s571_s11 }
  0x80   : > { %s843_s11 = smov %s659_s23  ;;  %s844_s12 = smov %s579_s13 }
  0x81   : > { %s845_s13 = smov %s847_s17  ;;  %20 = sbr.rel (!%p18_p2) target bundleno = 8 (0x8), region = 90 }
  0x88   :  { %266 = vsyncpa [#allocation3], 1 }
  0x89   :  { %268 = vsyncpa [#allocation3 + $0x1], 1 }
  0x8a   :  { %269 = vsyncpa [#allocation6], 1 }
  0x8b   :  { %271 = vsyncpa [#allocation6 + $0x1], 1 }
  0x8c   :  { %272 = vsyncpa [#allocation4], 1 }
  0x8d   :  { %274 = vsyncpa [#allocation4 + $0x1], 1 }

</bundles_post_ra>
